<compile_context>
chip_gen: v7x
topology: tpu7x:2x2x1
jax: 0.10.0
libtpu: 0.0.40
codegen_flags: <defaults>
</compile_context>

<pallas_src>
import functools

import jax
import jax.numpy as jnp
from jax.experimental import pallas as pl
from jax.experimental.pallas import tpu as pltpu

_HIDDEN = 64

# Row offsets inside the packed (192, 64) slab (all 8-sublane aligned).
_R_W2 = 0                       # rows [  0: 64]  W2  (out, in) = (64, 64)
_R_W3 = _HIDDEN                 # rows [ 64:128]  W3  (out, in), rows >= A zero
_R_B = 2 * _HIDDEN              # rows [128:192]  biases as columns 0/1/2
_SLAB_ROWS = 3 * _HIDDEN


def _round_up(x, m):
    return ((x + m - 1) // m) * m


def _dqn_kernel(x_ref, w1_ref, p_ref, o_ref, *, a_out):
    """Feature-major fused MLP: x (S, Bt) -> Q (a_out, Bt); batch on lanes."""
    h = _HIDDEN
    x = x_ref[...]                                  # (S, Bt) f32
    w1 = w1_ref[...]                                # (64, S)
    w2 = p_ref[_R_W2:_R_W2 + h, :]                  # (64, 64)
    w3 = p_ref[_R_W3:_R_W3 + h, :]                  # (64, 64), rows >= A zero
    bias = p_ref[_R_B:_R_B + h, :]                  # (64, 64); cols 0..2 = b1,b2,b3
    b1 = bias[:, 0:1]                               # (64, 1)
    b2 = bias[:, 1:2]
    b3 = bias[:, 2:3]

    # TODO(synk): layer 1 (K = state_dim = 4) underfills the MXU; it could be
    # done as 4 broadcast FMAs on the VPU for the latency-critical act path.
    h1 = jnp.maximum(jnp.dot(w1, x, preferred_element_type=jnp.float32) + b1, 0.0)
    h2 = jnp.maximum(jnp.dot(w2, h1, preferred_element_type=jnp.float32) + b2, 0.0)
    q = jnp.dot(w3, h2, preferred_element_type=jnp.float32) + b3   # (64, Bt)

    # Store only the first a_out (8-aligned) rows: lane-dense, unmasked store.
    o_ref[...] = q[:a_out, :].astype(o_ref.dtype)


def _pick_block_b(batch, num_cores, max_block_b):
    """One block unless splitting across v7x's two TensorCores or hitting the
    VMEM-safe cap.  Tiled blocks must be 128-divisible on the lane axis."""
    if num_cores > 1:
        bb = _round_up(pl.cdiv(batch, num_cores), 128)
    else:
        bb = batch
    bb = min(bb, max_block_b)
    if bb >= batch:
        return batch                      # single full-extent block
    return _round_up(bb, 128)


def dqn_forward(x, w1, param_slab, state_dim, num_actions, *,
                num_cores=1, max_block_b=4096):
    """x: (B, state_dim) f32 (PyTorch layout). Returns (B, num_actions) f32.

    w1: (64, state_dim) f32; param_slab: (192, 64) f32 from pack_dqn_params.
    num_cores=2 targets v7x megacore; leave at 1 for v5e/v6e.
    """
    B, S = x.shape
    assert S == state_dim
    assert num_actions <= _HIDDEN, "num_actions > 64 not supported by the slab"
    assert w1.shape == (_HIDDEN, state_dim)
    assert param_slab.shape == (_SLAB_ROWS, _HIDDEN)

    a_out = 8 * pl.cdiv(num_actions, 8)              # padded, sublane-aligned
    block_b = _pick_block_b(B, num_cores, max_block_b)
    grid = (pl.cdiv(B, block_b),)

    # Wrapper-side layout plumbing: present a lane-dense (S, B) slab to the kernel.
    x_t = x.T                                         # (S, B)

    kernel = functools.partial(_dqn_kernel, a_out=a_out)
    cost = pl.CostEstimate(
        flops=2 * B * _HIDDEN * (S + _HIDDEN + _HIDDEN),
        transcendentals=0,
        bytes_accessed=(B * S + _HIDDEN * S + _SLAB_ROWS * _HIDDEN + a_out * B) * 4,
    )

    q_pad = pl.pallas_call(
        kernel,
        out_shape=jax.ShapeDtypeStruct((a_out, B), jnp.float32),
        grid=grid,
        in_specs=[
            pl.BlockSpec((S, block_b), lambda i: (0, i)),          # x, batch on lanes
            pl.BlockSpec((_HIDDEN, S), lambda i: (0, 0)),          # w1, VMEM-resident
            pl.BlockSpec((_SLAB_ROWS, _HIDDEN), lambda i: (0, 0)),  # slab, VMEM-resident
        ],
        out_specs=pl.BlockSpec((a_out, block_b), lambda i: (0, i)),
        compiler_params=pltpu.CompilerParams(dimension_semantics=("parallel",)),
        cost_estimate=cost,
    )(x_t, w1, param_slab)

    return q_pad[:num_actions, :].T                   # (B, num_actions)


def init_dqn_params(key, state_dim, num_actions):
    """PyTorch-layout params (W: (out, in), b: (out,)), nn.Linear default init."""
    ks = jax.random.split(key, 6)

    def lin(kw, kb, out_f, in_f):
        bound = 1.0 / jnp.sqrt(jnp.float32(in_f))
        w = jax.random.uniform(kw, (out_f, in_f), jnp.float32, -bound, bound)
        b = jax.random.uniform(kb, (out_f,), jnp.float32, -bound, bound)
        return w, b

    w1, b1 = lin(ks[0], ks[1], _HIDDEN, state_dim)
    w2, b2 = lin(ks[2], ks[3], _HIDDEN, _HIDDEN)
    w3, b3 = lin(ks[4], ks[5], num_actions, _HIDDEN)
    return {"w1": w1, "b1": b1, "w2": w2, "b2": b2, "w3": w3, "b3": b3}


def pack_dqn_params(params, state_dim, num_actions):
    """One-time repack (call at init / after optimizer steps, NOT per call).

    Returns (w1, slab):
      w1   : (64, state_dim) f32, PyTorch (out, in) orientation.
      slab : (192, 64) f32 = [W2 (64,64); W3 zero-padded to (64,64);
             bias block whose columns 0/1/2 hold b1, b2, b3 (b3 zero-padded)].
    """
    assert num_actions <= _HIDDEN
    h = _HIDDEN
    slab = jnp.zeros((_SLAB_ROWS, h), jnp.float32)
    slab = slab.at[_R_W2:_R_W2 + h, :].set(params["w2"])
    slab = slab.at[_R_W3:_R_W3 + num_actions, :].set(params["w3"])
    slab = slab.at[_R_B:_R_B + h, 0].set(params["b1"])
    slab = slab.at[_R_B:_R_B + h, 1].set(params["b2"])
    slab = slab.at[_R_B:_R_B + num_actions, 2].set(params["b3"])
    return params["w1"].astype(jnp.float32), slab


def dqn_forward_ref(x, p):
    """Pure-JAX reference (full-precision matmuls)."""
    hp = jax.lax.Precision.HIGHEST
    h1 = jnp.maximum(jnp.dot(x, p["w1"].T, precision=hp) + p["b1"], 0.0)
    h2 = jnp.maximum(jnp.dot(h1, p["w2"].T, precision=hp) + p["b2"], 0.0)
    return jnp.dot(h2, p["w3"].T, precision=hp) + p["b3"]


if __name__ == "__main__":
    state_dim, num_actions = 4, 2             # CartPole-v1 dims

    key = jax.random.PRNGKey(0)
    kx, kxb, kp = jax.random.split(key, 3)
    params = init_dqn_params(kp, state_dim, num_actions)
    w1, slab = pack_dqn_params(params, state_dim, num_actions)

    # --- small "act" path: B=8, single grid step (v5e/v6e style) ------------
    x_small = jax.random.normal(kx, (8, state_dim), jnp.float32)
    q_small = jax.block_until_ready(
        dqn_forward(x_small, w1, slab, state_dim, num_actions))
    assert q_small.shape == (8, num_actions)
    assert jnp.allclose(q_small, dqn_forward_ref(x_small, params),
                        atol=1e-3, rtol=1e-3), "small-batch mismatch vs. reference"

    # --- batched "train/target" path: B=256, two lane-aligned blocks (v7x) --
    x_big = jax.random.normal(kxb, (256, state_dim), jnp.float32)
    q_big = jax.block_until_ready(
        dqn_forward(x_big, w1, slab, state_dim, num_actions, num_cores=2))
    assert q_big.shape == (256, num_actions)
    assert jnp.allclose(q_big, dqn_forward_ref(x_big, params),
                        atol=1e-3, rtol=1e-3), "batched mismatch vs. reference"

    print("KERNEL_OK")
</pallas_src>

<mosaic_0001>
module attributes {stable_mosaic.version = 11 : i64} {
  func.func @_dqn_kernel(%arg0: i32, %arg1: memref<4x8xf32, #tpu.memory_space<vmem>>, %arg2: memref<64x4xf32, #tpu.memory_space<vmem>>, %arg3: memref<192x64xf32, #tpu.memory_space<vmem>>, %arg4: memref<8x8xf32, #tpu.memory_space<vmem>>) attributes {dimension_semantics = [#tpu.dimension_semantics<parallel>], iteration_bounds = array<i64: 1>, scalar_prefetch = 0 : i64, scratch_operands = 0 : i64, tpu.core_type = #tpu.core_type<tc>, window_params = [{transform_indices = @transform_0, window_bounds = array<i64: 4, 8>}, {pipeline_mode = #tpu.pipeline_mode<synchronous>, transform_indices = @transform_1, window_bounds = array<i64: 64, 4>}, {pipeline_mode = #tpu.pipeline_mode<synchronous>, transform_indices = @transform_2, window_bounds = array<i64: 192, 64>}, {transform_indices = @transform_3, window_bounds = array<i64: 8, 8>}]} {
    %c0 = arith.constant 0 : index
    %c0_0 = arith.constant 0 : index
    %0 = vector.load %arg1[%c0, %c0_0] : memref<4x8xf32, #tpu.memory_space<vmem>>, vector<4x8xf32>
    %c0_1 = arith.constant 0 : index
    %c0_2 = arith.constant 0 : index
    %1 = vector.load %arg2[%c0_1, %c0_2] : memref<64x4xf32, #tpu.memory_space<vmem>>, vector<64x4xf32>
    %c0_3 = arith.constant 0 : index
    %c0_4 = arith.constant 0 : index
    %2 = vector.load %arg3[%c0_3, %c0_4] : memref<192x64xf32, #tpu.memory_space<vmem>>, vector<64x64xf32>
    %c64 = arith.constant 64 : index
    %c0_5 = arith.constant 0 : index
    %3 = vector.load %arg3[%c64, %c0_5] : memref<192x64xf32, #tpu.memory_space<vmem>>, vector<64x64xf32>
    %c128 = arith.constant 128 : index
    %c0_6 = arith.constant 0 : index
    %4 = vector.load %arg3[%c128, %c0_6] : memref<192x64xf32, #tpu.memory_space<vmem>>, vector<64x64xf32>
    %5 = vector.extract_strided_slice %4 {offsets = [0, 0], sizes = [64, 1], strides = [1, 1]} : vector<64x64xf32> to vector<64x1xf32>
    %6 = vector.extract_strided_slice %4 {offsets = [0, 1], sizes = [64, 1], strides = [1, 1]} : vector<64x64xf32> to vector<64x1xf32>
    %7 = vector.extract_strided_slice %4 {offsets = [0, 2], sizes = [64, 1], strides = [1, 1]} : vector<64x64xf32> to vector<64x1xf32>
    %cst = arith.constant dense<0.000000e+00> : vector<64x8xf32>
    %8 = tpu.matmul %1, %0, %cst {dimension_numbers = #tpu.dot_dimension_numbers<[1], [0], [0], [1], [0, 0, 1, 1], [], []>} : vector<64x4xf32>, vector<4x8xf32>, vector<64x8xf32> -> vector<64x8xf32>
    %9 = vector.broadcast %5 : vector<64x1xf32> to vector<64x8xf32>
    %10 = arith.addf %8, %9 : vector<64x8xf32>
    %cst_7 = arith.constant 0.000000e+00 : f32
    %11 = vector.broadcast %cst_7 : f32 to vector<64x8xf32>
    %12 = arith.maximumf %10, %11 : vector<64x8xf32>
    %cst_8 = arith.constant dense<0.000000e+00> : vector<64x8xf32>
    %13 = tpu.matmul %2, %12, %cst_8 {dimension_numbers = #tpu.dot_dimension_numbers<[1], [0], [0], [1], [0, 0, 1, 1], [], []>} : vector<64x64xf32>, vector<64x8xf32>, vector<64x8xf32> -> vector<64x8xf32>
    %14 = vector.broadcast %6 : vector<64x1xf32> to vector<64x8xf32>
    %15 = arith.addf %13, %14 : vector<64x8xf32>
    %cst_9 = arith.constant 0.000000e+00 : f32
    %16 = vector.broadcast %cst_9 : f32 to vector<64x8xf32>
    %17 = arith.maximumf %15, %16 : vector<64x8xf32>
    %cst_10 = arith.constant dense<0.000000e+00> : vector<64x8xf32>
    %18 = tpu.matmul %3, %17, %cst_10 {dimension_numbers = #tpu.dot_dimension_numbers<[1], [0], [0], [1], [0, 0, 1, 1], [], []>} : vector<64x64xf32>, vector<64x8xf32>, vector<64x8xf32> -> vector<64x8xf32>
    %19 = vector.broadcast %7 : vector<64x1xf32> to vector<64x8xf32>
    %20 = arith.addf %18, %19 : vector<64x8xf32>
    %21 = vector.extract_strided_slice %20 {offsets = [0, 0], sizes = [8, 8], strides = [1, 1]} : vector<64x8xf32> to vector<8x8xf32>
    %c0_11 = arith.constant 0 : index
    %c0_12 = arith.constant 0 : index
    %22 = vector.load %arg4[%c0_11, %c0_12] : memref<8x8xf32, #tpu.memory_space<vmem>>, vector<8x8xf32>
    tpu.vector_store %arg4[%c0_11, %c0_12], %21 {strides = array<i32>} : memref<8x8xf32, #tpu.memory_space<vmem>>, vector<8x8xf32>,
    return
  }
  func.func @transform_0(%arg0: i32) -> (i32, i32) {
    %c0_i32 = arith.constant 0 : i32
    %c0_i32_0 = arith.constant 0 : i32
    return %c0_i32, %arg0 : i32, i32
  }
  func.func @transform_1(%arg0: i32) -> (i32, i32) {
    %c0_i32 = arith.constant 0 : i32
    %c0_i32_0 = arith.constant 0 : i32
    %c0_i32_1 = arith.constant 0 : i32
    return %c0_i32, %c0_i32_0 : i32, i32
  }
  func.func @transform_2(%arg0: i32) -> (i32, i32) {
    %c0_i32 = arith.constant 0 : i32
    %c0_i32_0 = arith.constant 0 : i32
    %c0_i32_1 = arith.constant 0 : i32
    return %c0_i32, %c0_i32_0 : i32, i32
  }
  func.func @transform_3(%arg0: i32) -> (i32, i32) {
    %c0_i32 = arith.constant 0 : i32
    %c0_i32_0 = arith.constant 0 : i32
    return %c0_i32, %arg0 : i32, i32
  }
}

</mosaic_0001>

<bundles_post_ra>
// kernel: tpu_custom_call.1
= control target key start
LH: loop header
LB: loop body
LE: loop exit
PB: predicated region body
PF: predicated region fallthrough
CT: control target
= control target key end

     0   :  { %vm113_vm0 = vcmask 1043456   ;;  %vm88_vm1 = vcmask 31744   ;;  %v765_v4 = vmov 0   ;;  %s929_s0 = inlined_call_operand.vmem [shape: f32[4,8], index: 0, kind: input, shape index: {}]   ;;  %s930_s1 = inlined_call_operand.vmem [shape: f32[64,4], index: 1, kind: input, shape index: {}]   ;;  %s931_s2 = inlined_call_operand.vmem [shape: f32[192,64], index: 2, kind: input, shape index: {}]   ;;  %s932_s3 = inlined_call_operand.hbm [shape: f32[8,8], index: 3, kind: output, shape index: {}]  }
   0x1   :  { %v15_v0 = vld [vmem:[%s929_s0] sm:$0xf]  ;;  %v17_v2 = vld [vmem:[%s930_s1 + $0x8] sm:$0xff]  ;;  %v18_v3 = vld [vmem:[%s930_s1 + $0x10] sm:$0xff]  ;;  %735 = vset.pattern.permute.xlu0 %v765_v4  ;;  %736 = vset.pattern.permute.xlu1 %v765_v4 }
   0x2   :  { %v16_v1 = vld [vmem:[%s930_s1] sm:$0xff]  ;;  %629 = vmatprep.subr.msk.mxu0 %vm113_vm0, %v15_v0  ;;  %v42_v6 = vld [vmem:[%s931_s2 + $0x90] sm:$0xff]  ;;  %v19_v7 = vld [vmem:[%s930_s1 + $0x18] sm:$0xff] }
   0x3   :  { %631 = vmatprep.mubr.msk.f32.mxu0 %vm88_vm1, %v16_v1  ;;  %630 = vmatpush3.msk.msra.mxu0 %vm113_vm0, %v15_v0  ;;  %v806_v5 = vld [vmem:[%s931_s2 + $0x80] sm:$0xff]  ;;  %v41_v9 = vld [vmem:[%s931_s2 + $0x88] sm:$0xff] }
   0x4   :  { %632 = vmatmul.mubr.msk.f32.vlgmr.msra.gmra.mrb[0].mxu0 %vm88_vm1, %v17_v2  ;;  %50 = vperm.xlu0 %735, %v806_v5   ;;  %v20_v8 = vld [vmem:[%s930_s1 + $0x20] sm:$0xff] }
   0x5   :  { %634 = vmatprep.mubr.msk.f32.mxu0 %vm88_vm1, %v18_v3  ;;  %60 = vperm.xlu1 %736, %v42_v6  }
   0x6   :  { %8 = vsyncpa [#allocation3], 0  ;;  %v43_v10 = vld [vmem:[%s931_s2 + $0x98] sm:$0xff]  ;;  %v21_v11 = vld [vmem:[%s930_s1 + $0x28] sm:$0xff]  ;;  %vm262_vm2 = vcmask 523264   ;;  %v766_v19 = vmov 1  }
   0x7   :  { %v22_v12 = vld [vmem:[%s930_s1 + $0x30] sm:$0xff]  ;;  %v44_v13 = vld [vmem:[%s931_s2 + $0xa0] sm:$0xff]  ;;  %v45_v14 = vld [vmem:[%s931_s2 + $0xa8] sm:$0xff]  ;;  %v767_v0 = vmov 2   ;;  %s768_s0 = smov [#allocation2]   ;;  %vm547_vm3 = vcmask 64512  }
   0x8   :  { %635 = vmatmul.mubr.msk.f32.gmra.mrb[2].mxu0 %vm88_vm1, %v19_v7  ;;  %55 = vperm.xlu0 %735, %v41_v9   ;;  %v23_v15 = vld [vmem:[%s930_s1 + $0x38] sm:$0xff]  ;;  %v46_v16 = vld [vmem:[%s931_s2 + $0xb0] sm:$0xff]  ;;  %v24_v18 = vld [vmem:[%s931_s2] sm:$0xff]  ;;  %s555_s20 = sshll.u32 %s768_s0, 4  ;;  %s556_s20 = int_to_ptr.vmem [resolvable:$true] %s555_s20 }
   0x9   :  { %637 = vmatprep.mubr.msk.f32.mxu0 %vm88_vm1, %v20_v8  ;;  %65 = vperm.xlu1 %736, %v43_v10   ;;  %v47_v17 = vld [vmem:[%s931_s2 + $0xb8] sm:$0xff]  ;;  %v25_v56 = vld [vmem:[%s931_s2 + $0x8] sm:$0xff]  ;;  %v26_v57 = vld [vmem:[%s931_s2 + $0x10] sm:$0xff]  ;;  %s741_s21 = scalar_lea.vmem %s556_s20, 128  ;;  %p746_p1 = scmp.lt.s32.totalorder %s556_s20, %s556_s20 }
   0xa   :  { %659 = vmatprep.mubr.msk.f32.mxu1 %vm262_vm2, %v24_v18  ;;  %v27_v58 = vld [vmem:[%s931_s2 + $0x18] sm:$0xff]  ;;  %v28_v59 = vld [vmem:[%s931_s2 + $0x20] sm:$0xff]  ;;  %v29_v60 = vld [vmem:[%s931_s2 + $0x28] sm:$0xff]  ;;  %p742_p0 = scmp.ne.s32.totalorder %s556_s20, %s741_s21  ;;  %p747_p2 = scmp.lt.s32.totalorder %s741_s21, %s741_s21 }
   0xb   :  { %v30_v61 = vld [vmem:[%s931_s2 + $0x30] sm:$0xff]  ;;  %v31_v62 = vld [vmem:[%s931_s2 + $0x38] sm:$0xff]  ;;  %v32_v63 = vld [vmem:[%s931_s2 + $0x40] sm:$0xff] }
   0xc   :  { %638 = vmatmul.mubr.msk.f32.gmra.mrb[4].mxu0 %vm88_vm1, %v21_v11  ;;  %70 = vperm.xlu0 %735, %v44_v13   ;;  %p748_p3 = por %p747_p2, %p746_p1 }
   0xd   :  { %640 = vmatprep.mubr.msk.f32.mxu0 %vm88_vm1, %v22_v12  ;;  %75 = vperm.xlu1 %736, %v45_v14  }
   0xe   :  { %p749_p4 = pnand %p748_p3, %p742_p0 }
  0x10   :  { %641 = vmatmul.mubr.msk.f32.gmra.mrb[6].mxu0 %vm88_vm1, %v23_v15  ;;  %80 = vperm.xlu0 %735, %v46_v16  }
  0x11   :  { %85 = vperm.xlu1 %736, %v47_v17   ;;  %687 = vmatprep.mubr.msk.f32.mxu0 %vm262_vm2, %v32_v63 }
  0x14   :  { %737 = vset.pattern.permute.xlu0 %v766_v19 }
  0x15   :  { %738 = vset.pattern.permute.xlu1 %v766_v19  ;;  %231 = vperm.xlu0 %737, %v806_v5  }
  0x16   :  { %235 = vperm.xlu1 %738, %v41_v9  }
  0x19   :  { %243 = vperm.xlu0 %737, %v43_v10  }
  0x1a   :  { %239 = vperm.xlu1 %738, %v42_v6  }
  0x1d   :  { %251 = vperm.xlu0 %737, %v45_v14  }
  0x1e   :  { %247 = vperm.xlu1 %738, %v44_v13  }
  0x21   :  { %259 = vperm.xlu0 %737, %v47_v17  }
  0x22   :  { %255 = vperm.xlu1 %738, %v46_v16  }
  0x25   :  { %740 = vset.pattern.permute.xlu0 %v767_v0 }
  0x26   :  { %739 = vset.pattern.permute.xlu1 %v767_v0 }
  0x27   :  { %401 = vperm.xlu1 %739, %v806_v5  }
  0x83   :  { %v51_v20 = vpop.permute.xlu0 %50 }
  0x84   :  { %v61_v21 = vpop.permute.xlu1 %60 }
  0x87   :  { %v56_v22 = vpop.permute.xlu0 %55 }
  0x88   :  { %v66_v23 = vpop.permute.xlu1 %65 }
  0x8b   :  { %v71_v36 = vpop.permute.xlu0 %70 }
  0x8c   :  { %v76_v33 = vpop.permute.xlu1 %75 }
  0x8f   :  { %v81_v48 = vpop.permute.xlu0 %80 }
  0x90   :  { %v86_v45 = vpop.permute.xlu1 %85 }
  0x94   :  { %v232_v1 = vpop.permute.xlu0 %231 }
  0x95   :  { %v236_v2 = vpop.permute.xlu1 %235 }
  0x98   :  { %v244_v3 = vpop.permute.xlu0 %243 }
  0x99   :  { %v240_v6 = vpop.permute.xlu1 %239 }
  0x9c   :  { %v252_v15 = vpop.permute.xlu0 %251 }
  0x9d   :  { %v248_v18 = vpop.permute.xlu1 %247 }
  0xd7   :  { %v633_v24 = vpop.f32.mrb[0].mxu0 }
  0xd8   :  { %v189_v25 = vadd.f32 %v633_v24, %v56_v22  ;;  %v183_v26 = vpop.f32.mrb[1].mxu0 }
  0xd9   :  { %v184_v27 = vadd.f32 %v183_v26, %v51_v20  ;;  %v260_v26 = vpop.permute.xlu0 %259 }
  0xda   :  { %v223_v28 = vmax.f32 %v189_v25, 0.0 }
  0xdb   :  { %v222_v29 = vmax.f32 %v184_v27, 0.0  ;;  %v636_v30 = vpop.f32.mrb[2].mxu0 }
  0xdc   :  { %v199_v31 = vadd.f32 %v636_v30, %v66_v23  ;;  %v193_v32 = vpop.f32.mrb[3].mxu0 }
  0xdd   :  { %v194_v34 = vadd.f32 %v193_v32, %v61_v21  ;;  %v699_v35 = vpack.c.bf16 %v223_v28, %v222_v29  ;;  %v256_v29 = vpop.permute.xlu1 %255 }
  0xde   :  { %v225_v37 = vmax.f32 %v199_v31, 0.0 }
  0xdf   :  { %v224_v38 = vmax.f32 %v194_v34, 0.0  ;;  %v639_v39 = vpop.f32.mrb[4].mxu0  ;;  %700 = vmatprep.subr.bf16.mxu1 %v699_v35 }
  0xe0   :  { %v209_v40 = vadd.f32 %v639_v39, %v76_v33  ;;  %v203_v41 = vpop.f32.mrb[5].mxu0  ;;  %702 = vmatpush3.bf16.msra.mxu1 %v699_v35  ;;  %v35_v39 = vld [vmem:[%s931_s2 + $0x58] sm:$0xff] }
  0xe1   :  { %v703_v42 = vpack.c.bf16 %v225_v37, %v224_v38  ;;  %v204_v43 = vadd.f32 %v203_v41, %v71_v36  ;;  %v33_v37 = vld [vmem:[%s931_s2 + $0x48] sm:$0xff]  ;;  %v34_v38 = vld [vmem:[%s931_s2 + $0x50] sm:$0xff] }
  0xe2   :  { %v227_v44 = vmax.f32 %v209_v40, 0.0  ;;  %v36_v40 = vld [vmem:[%s931_s2 + $0x60] sm:$0xff]  ;;  %v37_v41 = vld [vmem:[%s931_s2 + $0x68] sm:$0xff] }
  0xe3   :  { %v226_v46 = vmax.f32 %v204_v43, 0.0  ;;  %v642_v47 = vpop.f32.mrb[6].mxu0  ;;  %704 = vmatprep.subr.bf16.mxu1 %v703_v42  ;;  %v39_v43 = vld [vmem:[%s931_s2 + $0x78] sm:$0xff] }
  0xe4   :  { %v219_v49 = vadd.f32 %v642_v47, %v86_v45  ;;  %v213_v50 = vpop.f32.mrb[7].mxu0  ;;  %706 = vmatpush3.bf16.msra.mxu1 %v703_v42  ;;  %v38_v42 = vld [vmem:[%s931_s2 + $0x70] sm:$0xff] }
  0xe5   :  { %v707_v51 = vpack.c.bf16 %v227_v44, %v226_v46  ;;  %v214_v52 = vadd.f32 %v213_v50, %v81_v48  ;;  %v402_v44 = vpop.permute.xlu1 %401 }
  0xe6   :  { %v229_v53 = vmax.f32 %v219_v49, 0.0 }
  0xe7   :  { %v228_v54 = vmax.f32 %v214_v52, 0.0  ;;  %708 = vmatprep.subr.bf16.mxu1 %v707_v51 }
  0xe8   :  { %710 = vmatpush3.bf16.msra.mxu1 %v707_v51 }
  0xe9   :  { %v711_v55 = vpack.c.bf16 %v229_v53, %v228_v54 }
  0xeb   :  { %712 = vmatprep.subr.bf16.mxu1 %v711_v55 }
  0xec   :  { %714 = vmatpush3.bf16.msra.mxu1 %v711_v55 }
  0xef   :  { %660 = vmatmul.mubr.msk.f32.vlgmr.msra.gmra.mrb[0].mxu1 %vm262_vm2, %v25_v56 }
  0xf0   :  { %662 = vmatprep.mubr.msk.f32.mxu1 %vm262_vm2, %v26_v57 }
  0xf3   :  { %663 = vmatmul.mubr.msk.f32.gmra.mrb[2].mxu1 %vm262_vm2, %v27_v58 }
  0xf4   :  { %665 = vmatprep.mubr.msk.f32.mxu1 %vm262_vm2, %v28_v59 }
  0xf7   :  { %666 = vmatmul.mubr.msk.f32.gmra.mrb[4].mxu1 %vm262_vm2, %v29_v60 }
  0xf8   :  { %668 = vmatprep.mubr.msk.f32.mxu1 %vm262_vm2, %v30_v61 }
  0xfb   :  { %669 = vmatmul.mubr.msk.f32.gmra.mrb[6].mxu1 %vm262_vm2, %v31_v62 }
 0x1c2   :  { %v661_v4 = vpop.f32.mrb[0].mxu1 }
 0x1c3   :  { %v359_v7 = vadd.f32 %v661_v4, %v236_v2  ;;  %v353_v8 = vpop.f32.mrb[1].mxu1 }
 0x1c4   :  { %v354_v9 = vadd.f32 %v353_v8, %v232_v1 }
 0x1c5   :  { %v393_v10 = vmax.f32 %v359_v7, 0.0 }
 0x1c6   :  { %v392_v11 = vmax.f32 %v354_v9, 0.0  ;;  %v664_v12 = vpop.f32.mrb[2].mxu1 }
 0x1c7   :  { %v369_v13 = vadd.f32 %v664_v12, %v244_v3  ;;  %v363_v14 = vpop.f32.mrb[3].mxu1 }
 0x1c8   :  { %v715_v16 = vpack.c.bf16 %v393_v10, %v392_v11  ;;  %v364_v17 = vadd.f32 %v363_v14, %v240_v6 }
 0x1c9   :  { %v395_v19 = vmax.f32 %v369_v13, 0.0 }
 0x1ca   :  { %v394_v20 = vmax.f32 %v364_v17, 0.0  ;;  %v667_v5 = vpop.f32.mrb[4].mxu1  ;;  %716 = vmatprep.subr.bf16.mxu0 %v715_v16 }
 0x1cb   :  { %v379_v21 = vadd.f32 %v667_v5, %v252_v15  ;;  %v373_v22 = vpop.f32.mrb[5].mxu1  ;;  %718 = vmatpush3.bf16.msra.mxu0 %v715_v16 }
 0x1cc   :  { %v719_v23 = vpack.c.bf16 %v395_v19, %v394_v20  ;;  %v374_v24 = vadd.f32 %v373_v22, %v248_v18 }
 0x1cd   :  { %v397_v25 = vmax.f32 %v379_v21, 0.0 }
 0x1ce   :  { %v396_v27 = vmax.f32 %v374_v24, 0.0  ;;  %v670_v28 = vpop.f32.mrb[6].mxu1  ;;  %720 = vmatprep.subr.bf16.mxu0 %v719_v23 }
 0x1cf   :  { %v389_v30 = vadd.f32 %v670_v28, %v260_v26  ;;  %v383_v31 = vpop.f32.mrb[7].mxu1  ;;  %722 = vmatpush3.bf16.msra.mxu0 %v719_v23 }
 0x1d0   :  { %v723_v32 = vpack.c.bf16 %v397_v25, %v396_v27  ;;  %v384_v33 = vadd.f32 %v383_v31, %v256_v29 }
 0x1d1   :  { %v399_v34 = vmax.f32 %v389_v30, 0.0 }
 0x1d2   :  { %v398_v35 = vmax.f32 %v384_v33, 0.0  ;;  %724 = vmatprep.subr.bf16.mxu0 %v723_v32 }
 0x1d3   :  { %726 = vmatpush3.bf16.msra.mxu0 %v723_v32 }
 0x1d4   :  { %v727_v36 = vpack.c.bf16 %v399_v34, %v398_v35 }
 0x1d6   :  { %728 = vmatprep.subr.bf16.mxu0 %v727_v36 }
 0x1d7   :  { %730 = vmatpush3.bf16.msra.mxu0 %v727_v36 }
 0x1da   :  { %688 = vmatmul.mubr.msk.f32.vlgmr.msra.gmra.mrb[8].mxu0 %vm262_vm2, %v33_v37 }
 0x1db   :  { %690 = vmatprep.mubr.msk.f32.mxu0 %vm262_vm2, %v34_v38 }
 0x1de   :  { %691 = vmatmul.mubr.msk.f32.gmra.mrb[10].mxu0 %vm262_vm2, %v35_v39 }
 0x1df   :  { %693 = vmatprep.mubr.msk.f32.mxu0 %vm262_vm2, %v36_v40 }
 0x1e2   :  { %694 = vmatmul.mubr.msk.f32.gmra.mrb[12].mxu0 %vm262_vm2, %v37_v41 }
 0x1e3   :  { %696 = vmatprep.mubr.msk.f32.mxu0 %vm262_vm2, %v38_v42 }
 0x1e6   :  { %697 = vmatmul.mubr.msk.f32.gmra.mrb[14].mxu0 %vm262_vm2, %v39_v43 }
 0x2ad   :  { %v689_v45 = vpop.f32.mrb[8].mxu0 }
 0x2ae   :  { %v515_v46 = vpop.f32.mrb[9].mxu0 }
 0x2af   :  { %v516_v47 = vadd.f32 %v515_v46, %v402_v44 }
 0x2b1   :  { %v692_v48 = vpop.f32.mrb[10].mxu0  ;;  %548 = vst.msk [vmem:[#allocation2] sm:$0xff] %vm547_vm3, %v516_v47 }
 0x2b2   :  { %v524_v49 = vpop.f32.mrb[11].mxu0 }
 0x2b3   :  { %752 = shalt.err (!%p749_p4)
}
 0x2b4   :  { %s753_s23 = scalar_lea.hbm %s932_s3, 128 }
 0x2b5   :  { %p754_p5 = scmp.ne.s32.totalorder %s932_s3, %s753_s23  ;;  %p757_p6 = scmp.lt.u32.totalorder %s753_s23, %s932_s3 }
 0x2b7   :  { %p759_p7 = pnand %p757_p6, %p754_p5 }
 0x2b9   :  { %762 = shalt.err (!%p759_p7)
}
 0x2ba   :  { %558 = dma.vmem_to_hbm [thread:$0]  %s556_s20, 128, %s932_s3, [#allocation3]   ;;  %v695_v50 = vpop.f32.mrb[12].mxu0 }
 0x2bb   :  { %v532_v51 = vpop.f32.mrb[13].mxu0 }
 0x2bc   :  { %v698_v52 = vpop.f32.mrb[14].mxu0 }
 0x2bd   :  { %v540_v53 = vpop.f32.mrb[15].mxu0 }
 0x2be   :  { %763 = dma.done.wait [#allocation3], 128  }
 0x2bf   :  { %764 = vsyncadd [#allocation3], 4294967168 }
 0x2c0   :  { %562 = vsyncpa [#allocation3], 1 }

</bundles_post_ra>
